<compile_context>
chip_gen: v7x
topology: tpu7x:2x2x1
jax: 0.10.0
libtpu: 0.0.40
codegen_flags: <defaults>
</compile_context>

<pallas_src>
import jax
import jax.numpy as jnp
from jax.experimental import pallas as pl
from jax.experimental.pallas import tpu as pltpu


def _mlp_disc_kernel(x_ref, w1t_ref, b1_ref, w2t_ref, b2_ref, w3_ref, b3_ref, o_ref):
    """One batch tile of the fused 3-layer discriminator MLP (batch-major layout).

    x_ref   : (TILE_N, D_IN) f32   -- flattened image tile (contiguous HBM rows)
    w1t_ref : (D_IN, H1)     bf16  -- W1^T (pre-transposed once in the wrapper)
    b1_ref  : (1, H1)        f32
    w2t_ref : (H1, H2)       bf16  -- W2^T
    b2_ref  : (1, H2)        f32
    w3_ref  : (1, H2)        f32   -- last layer has out_features == 1
    b3_ref  : (1, 1)         f32   -- SMEM scalar
    o_ref   : (TILE_N, 1)    f32   -- sigmoid probabilities
    """
    # In-kernel bf16 cast of x (VPU filler hidden under the x-tile DMA).
    x_bf = x_ref[...].astype(jnp.bfloat16)

    # layer 1: Linear(D_IN -> H1) + LeakyReLU(0.2).  bf16 MXU matmul, f32 accumulate.
    h1 = jnp.dot(x_bf, w1t_ref[...], preferred_element_type=jnp.float32)   # (TILE_N, H1)
    h1 = h1 + b1_ref[...]                          # sublane broadcast of lane-dense bias
    h1 = jnp.where(h1 > 0, h1, 0.2 * h1)           # f32 VPU math

    # layer 2: Linear(H1 -> H2) + LeakyReLU(0.2)
    h2 = jnp.dot(h1.astype(jnp.bfloat16), w2t_ref[...],
                 preferred_element_type=jnp.float32)                       # (TILE_N, H2)
    h2 = h2 + b2_ref[...]
    h2 = jnp.where(h2 > 0, h2, 0.2 * h2)

    # layer 3: Linear(H2 -> 1) + Sigmoid, as a VPU multiply + lane (XLU) reduce instead of
    # an output-width-1 MXU matmul (avoids a wasted MXU fill/drain on the critical path).
    h3 = jnp.sum(h2 * w3_ref[...], axis=1, keepdims=True) + b3_ref[0, 0]   # (TILE_N, 1)
    o_ref[...] = jax.nn.sigmoid(h3).astype(o_ref.dtype)


def _pick_tile_n(n, max_tile=1024):
    """Batch tile: big enough to amortize per-step overhead, >= 2 grid steps when possible
    (keeps both v7x TensorCores busy), sublane-aligned, and never forces a padding copy."""
    if n <= 8:
        return n                                    # single block equal to the array dim
    if n <= 2 * max_tile:
        t = ((pl.cdiv(n, 2) + 7) // 8) * 8          # ~half the batch, rounded to sublanes
        return min(t, max_tile)
    return max_tile


def vanilla_discriminator_forward(x_nchw, params, *, max_tile_n=1024):
    """x_nchw: (N, C, H, W) float32.  Returns probs (N, 1) — matches fc1(x.view(-1, D))."""
    n = x_nchw.shape[0]
    h1_dim, d_in = params["w1"].shape
    h2_dim = params["w2"].shape[0]

    # x.view(-1, input_dim): row-major reshape, identical to torch .view (no data movement).
    # x stays f32 in HBM; the bf16 cast happens in-kernel.
    x_flat = x_nchw.reshape(n, d_in)

    # One-time (tiny) weight prep: transpose W1/W2 to (in, out) bf16; biases / last-layer
    # row / b3 scalar stay f32 and lane-dense.
    w1t = params["w1"].T.astype(jnp.bfloat16)              # (D_IN, H1)
    w2t = params["w2"].T.astype(jnp.bfloat16)              # (H1, H2)
    b1 = params["b1"].reshape(1, h1_dim).astype(jnp.float32)
    b2 = params["b2"].reshape(1, h2_dim).astype(jnp.float32)
    w3 = params["w3"].reshape(1, h2_dim).astype(jnp.float32)
    b3 = params["b3"].reshape(1, 1).astype(jnp.float32)    # SMEM scalar

    tile_n = _pick_tile_n(n, max_tile_n)
    grid = (pl.cdiv(n, tile_n),)       # boundary block may be partial; no jnp.pad copy

    flops = 2 * n * (d_in * h1_dim + h1_dim * h2_dim + h2_dim)
    bytes_accessed = (x_flat.size * 4 + w1t.size * 2 + w2t.size * 2
                      + (b1.size + b2.size + w3.size + b3.size) * 4 + n * 4)

    out = pl.pallas_call(
        _mlp_disc_kernel,
        out_shape=jax.ShapeDtypeStruct((n, 1), jnp.float32),
        grid=grid,
        in_specs=[
            pl.BlockSpec((tile_n, d_in), lambda i: (i, 0)),      # x tile (pipelined, f32)
            pl.BlockSpec((d_in, h1_dim), lambda i: (0, 0)),      # W1^T (VMEM-resident)
            pl.BlockSpec((1, h1_dim), lambda i: (0, 0)),         # b1 row
            pl.BlockSpec((h1_dim, h2_dim), lambda i: (0, 0)),    # W2^T
            pl.BlockSpec((1, h2_dim), lambda i: (0, 0)),         # b2 row
            pl.BlockSpec((1, h2_dim), lambda i: (0, 0)),         # w3 row
            pl.BlockSpec(memory_space=pltpu.MemorySpace.SMEM),   # b3 scalar
        ],
        out_specs=pl.BlockSpec((tile_n, 1), lambda i: (i, 0)),
        compiler_params=pltpu.CompilerParams(
            dimension_semantics=("parallel",)),
        cost_estimate=pl.CostEstimate(
            flops=flops, transcendentals=n, bytes_accessed=bytes_accessed),
    )(x_flat, w1t, b1, w2t, b2, w3, b3)

    return out


def _init_linear(key, fan_in, fan_out):
    """PyTorch default init: U(-1/sqrt(fan_in), 1/sqrt(fan_in)); weight is (out, in)."""
    kw, kb = jax.random.split(key)
    bound = 1.0 / jnp.sqrt(jnp.float32(fan_in))
    w = jax.random.uniform(kw, (fan_out, fan_in), jnp.float32, -bound, bound)
    b = jax.random.uniform(kb, (fan_out,), jnp.float32, -bound, bound)
    return w, b


def make_params(key, d_in=1024, h1=128, h2=64, d_out=1):
    k1, k2, k3 = jax.random.split(key, 3)
    w1, b1 = _init_linear(k1, d_in, h1)       # (128, 1024), (128,)
    w2, b2 = _init_linear(k2, h1, h2)         # (64, 128),   (64,)
    w3, b3 = _init_linear(k3, h2, d_out)      # (1, 64),     (1,)
    return {"w1": w1, "b1": b1, "w2": w2, "b2": b2, "w3": w3, "b3": b3}


def _reference(x_nchw, params):
    """Pure-JAX reference mirroring the kernel numerics (bf16 matmul operands, f32 math)."""
    n = x_nchw.shape[0]
    d_in = params["w1"].shape[1]
    x = x_nchw.reshape(n, d_in)
    h = jnp.dot(x.astype(jnp.bfloat16), params["w1"].astype(jnp.bfloat16).T,
                preferred_element_type=jnp.float32) + params["b1"]
    h = jnp.where(h > 0, h, 0.2 * h)
    h = jnp.dot(h.astype(jnp.bfloat16), params["w2"].astype(jnp.bfloat16).T,
                preferred_element_type=jnp.float32) + params["b2"]
    h = jnp.where(h > 0, h, 0.2 * h)
    h = h @ params["w3"].T + params["b3"]
    return jax.nn.sigmoid(h)   # (N, 1)


if __name__ == "__main__":
    key = jax.random.PRNGKey(0)
    k_x, k_p = jax.random.split(key)

    N, C, H, W = 2, 4, 16, 16          # input image dims -> flattened D = 1024
    x = jax.random.normal(k_x, (N, C, H, W), dtype=jnp.float32)
    params = make_params(k_p, d_in=C * H * W, h1=128, h2=64, d_out=1)

    probs = jax.block_until_ready(vanilla_discriminator_forward(x, params))
    ref = _reference(x, params)
    assert probs.shape == (N, 1), probs.shape
    # bf16 matmul operands -> compare against a matching-precision reference.
    assert jnp.allclose(probs, ref, atol=2e-3, rtol=2e-3), (probs, ref)

    # Exercise the no-pad multi-tile path (partial boundary block, 2 grid steps).
    N2 = 10
    x2 = jax.random.normal(jax.random.PRNGKey(1), (N2, C, H, W), dtype=jnp.float32)
    probs2 = jax.block_until_ready(vanilla_discriminator_forward(x2, params))
    ref2 = _reference(x2, params)
    assert probs2.shape == (N2, 1), probs2.shape
    assert jnp.allclose(probs2, ref2, atol=2e-3, rtol=2e-3), (probs2, ref2)

    print("KERNEL_OK")
</pallas_src>

<mosaic_0001>
module attributes {stable_mosaic.version = 11 : i64} {
  func.func @_mlp_disc_kernel(%arg0: i32, %arg1: memref<2x1024xf32, #tpu.memory_space<vmem>>, %arg2: memref<1024x128xbf16, #tpu.memory_space<vmem>>, %arg3: memref<1x128xf32, #tpu.memory_space<vmem>>, %arg4: memref<128x64xbf16, #tpu.memory_space<vmem>>, %arg5: memref<1x64xf32, #tpu.memory_space<vmem>>, %arg6: memref<1x64xf32, #tpu.memory_space<vmem>>, %arg7: memref<1x1xf32, #tpu.memory_space<smem>>, %arg8: memref<2x1xf32, #tpu.memory_space<vmem>>) attributes {dimension_semantics = [#tpu.dimension_semantics<parallel>], iteration_bounds = array<i64: 1>, scalar_prefetch = 0 : i64, scratch_operands = 0 : i64, tpu.core_type = #tpu.core_type<tc>, window_params = [{transform_indices = @transform_0, window_bounds = array<i64: 2, 1024>}, {pipeline_mode = #tpu.pipeline_mode<synchronous>, transform_indices = @transform_1, window_bounds = array<i64: 1024, 128>}, {pipeline_mode = #tpu.pipeline_mode<synchronous>, transform_indices = @transform_2, window_bounds = array<i64: 1, 128>}, {pipeline_mode = #tpu.pipeline_mode<synchronous>, transform_indices = @transform_3, window_bounds = array<i64: 128, 64>}, {pipeline_mode = #tpu.pipeline_mode<synchronous>, transform_indices = @transform_4, window_bounds = array<i64: 1, 64>}, {pipeline_mode = #tpu.pipeline_mode<synchronous>, transform_indices = @transform_5, window_bounds = array<i64: 1, 64>}, {transform_indices = @transform_6, window_bounds = array<i64: 1, 1>}, {transform_indices = @transform_7, window_bounds = array<i64: 2, 1>}]} {
    %c0 = arith.constant 0 : index
    %c0_0 = arith.constant 0 : index
    %0 = vector.load %arg1[%c0, %c0_0] : memref<2x1024xf32, #tpu.memory_space<vmem>>, vector<2x1024xf32>
    %1 = arith.truncf %0 : vector<2x1024xf32> to vector<2x1024xbf16>
    %c0_1 = arith.constant 0 : index
    %c0_2 = arith.constant 0 : index
    %2 = vector.load %arg2[%c0_1, %c0_2] : memref<1024x128xbf16, #tpu.memory_space<vmem>>, vector<1024x128xbf16>
    %cst = arith.constant dense<0.000000e+00> : vector<2x128xf32>
    %3 = tpu.matmul %1, %2, %cst {dimension_numbers = #tpu.dot_dimension_numbers<[1], [0], [0], [1], [0, 0, 1, 1], [], []>} : vector<2x1024xbf16>, vector<1024x128xbf16>, vector<2x128xf32> -> vector<2x128xf32>
    %c0_3 = arith.constant 0 : index
    %c0_4 = arith.constant 0 : index
    %4 = vector.load %arg3[%c0_3, %c0_4] : memref<1x128xf32, #tpu.memory_space<vmem>>, vector<1x128xf32>
    %5 = vector.broadcast %4 : vector<1x128xf32> to vector<2x128xf32>
    %6 = arith.addf %3, %5 : vector<2x128xf32>
    %cst_5 = arith.constant 0.000000e+00 : f32
    %7 = vector.broadcast %cst_5 : f32 to vector<2x128xf32>
    %8 = arith.cmpf ogt, %6, %7 : vector<2x128xf32>
    %cst_6 = arith.constant 2.000000e-01 : f32
    %9 = vector.broadcast %cst_6 : f32 to vector<2x128xf32>
    %10 = arith.mulf %9, %6 : vector<2x128xf32>
    %11 = arith.select %8, %6, %10 : vector<2x128xi1>, vector<2x128xf32>
    %12 = arith.truncf %11 : vector<2x128xf32> to vector<2x128xbf16>
    %c0_7 = arith.constant 0 : index
    %c0_8 = arith.constant 0 : index
    %13 = vector.load %arg4[%c0_7, %c0_8] : memref<128x64xbf16, #tpu.memory_space<vmem>>, vector<128x64xbf16>
    %cst_9 = arith.constant dense<0.000000e+00> : vector<2x64xf32>
    %14 = tpu.matmul %12, %13, %cst_9 {dimension_numbers = #tpu.dot_dimension_numbers<[1], [0], [0], [1], [0, 0, 1, 1], [], []>} : vector<2x128xbf16>, vector<128x64xbf16>, vector<2x64xf32> -> vector<2x64xf32>
    %c0_10 = arith.constant 0 : index
    %c0_11 = arith.constant 0 : index
    %15 = vector.load %arg5[%c0_10, %c0_11] : memref<1x64xf32, #tpu.memory_space<vmem>>, vector<1x64xf32>
    %16 = vector.broadcast %15 : vector<1x64xf32> to vector<2x64xf32>
    %17 = arith.addf %14, %16 : vector<2x64xf32>
    %cst_12 = arith.constant 0.000000e+00 : f32
    %18 = vector.broadcast %cst_12 : f32 to vector<2x64xf32>
    %19 = arith.cmpf ogt, %17, %18 : vector<2x64xf32>
    %cst_13 = arith.constant 2.000000e-01 : f32
    %20 = vector.broadcast %cst_13 : f32 to vector<2x64xf32>
    %21 = arith.mulf %20, %17 : vector<2x64xf32>
    %22 = arith.select %19, %17, %21 : vector<2x64xi1>, vector<2x64xf32>
    %c0_14 = arith.constant 0 : index
    %c0_15 = arith.constant 0 : index
    %23 = vector.load %arg6[%c0_14, %c0_15] : memref<1x64xf32, #tpu.memory_space<vmem>>, vector<1x64xf32>
    %24 = vector.broadcast %23 : vector<1x64xf32> to vector<2x64xf32>
    %25 = arith.mulf %22, %24 : vector<2x64xf32>
    %cst_16 = arith.constant dense<0.000000e+00> : vector<2xf32>
    %26 = vector.multi_reduction <add>, %25, %cst_16 [1] : vector<2x64xf32> to vector<2xf32>
    %27 = vector.shape_cast %26 : vector<2xf32> to vector<2x1xf32>
    %c0_17 = arith.constant 0 : index
    %c0_18 = arith.constant 0 : index
    %28 = memref.load %arg7[%c0_17, %c0_18] : memref<1x1xf32, #tpu.memory_space<smem>>
    %29 = vector.broadcast %28 : f32 to vector<2x1xf32>
    %30 = arith.addf %27, %29 : vector<2x1xf32>
    %31 = arith.negf %30 : vector<2x1xf32>
    %32 = math.exp %31 : vector<2x1xf32>
    %cst_19 = arith.constant 1.000000e+00 : f32
    %33 = vector.broadcast %cst_19 : f32 to vector<2x1xf32>
    %34 = arith.addf %33, %32 : vector<2x1xf32>
    %35 = arith.divf %33, %34 : vector<2x1xf32>
    %c0_20 = arith.constant 0 : index
    %c0_21 = arith.constant 0 : index
    %36 = vector.load %arg8[%c0_20, %c0_21] : memref<2x1xf32, #tpu.memory_space<vmem>>, vector<2x1xf32>
    tpu.vector_store %arg8[%c0_20, %c0_21], %35 {strides = array<i32>} : memref<2x1xf32, #tpu.memory_space<vmem>>, vector<2x1xf32>,
    return
  }
  func.func @transform_0(%arg0: i32) -> (i32, i32) {
    %c0_i32 = arith.constant 0 : i32
    %c0_i32_0 = arith.constant 0 : i32
    return %arg0, %c0_i32 : i32, i32
  }
  func.func @transform_1(%arg0: i32) -> (i32, i32) {
    %c0_i32 = arith.constant 0 : i32
    %c0_i32_0 = arith.constant 0 : i32
    %c0_i32_1 = arith.constant 0 : i32
    return %c0_i32, %c0_i32_0 : i32, i32
  }
  func.func @transform_2(%arg0: i32) -> (i32, i32) {
    %c0_i32 = arith.constant 0 : i32
    %c0_i32_0 = arith.constant 0 : i32
    %c0_i32_1 = arith.constant 0 : i32
    return %c0_i32, %c0_i32_0 : i32, i32
  }
  func.func @transform_3(%arg0: i32) -> (i32, i32) {
    %c0_i32 = arith.constant 0 : i32
    %c0_i32_0 = arith.constant 0 : i32
    %c0_i32_1 = arith.constant 0 : i32
    return %c0_i32, %c0_i32_0 : i32, i32
  }
  func.func @transform_4(%arg0: i32) -> (i32, i32) {
    %c0_i32 = arith.constant 0 : i32
    %c0_i32_0 = arith.constant 0 : i32
    %c0_i32_1 = arith.constant 0 : i32
    return %c0_i32, %c0_i32_0 : i32, i32
  }
  func.func @transform_5(%arg0: i32) -> (i32, i32) {
    %c0_i32 = arith.constant 0 : i32
    %c0_i32_0 = arith.constant 0 : i32
    %c0_i32_1 = arith.constant 0 : i32
    return %c0_i32, %c0_i32_0 : i32, i32
  }
  func.func @transform_6(%arg0: i32) -> (i32, i32) {
    %c0_i32 = arith.constant 0 : i32
    %c0_i32_0 = arith.constant 0 : i32
    %c0_i32_1 = arith.constant 0 : i32
    return %c0_i32, %c0_i32_0 : i32, i32
  }
  func.func @transform_7(%arg0: i32) -> (i32, i32) {
    %c0_i32 = arith.constant 0 : i32
    %c0_i32_0 = arith.constant 0 : i32
    return %arg0, %c0_i32 : i32, i32
  }
}

</mosaic_0001>

<bundles_post_ra>
// kernel: tpu_custom_call.1
= control target key start
LH: loop header
LB: loop body
LE: loop exit
PB: predicated region body
PF: predicated region fallthrough
CT: control target
= control target key end

     0   :  { %13 = vsyncpa [#allocation4], 0  ;;  %s1222_s24 = smov [#allocation3]   ;;  %s1331_s0 = inlined_call_operand.vmem [shape: f32[2,1024], index: 0, kind: input, shape index: {}]   ;;  %s1332_s1 = inlined_call_operand.hbm [shape: bf16[1024,128], index: 1, kind: input, shape index: {}]   ;;  %s1333_s2 = inlined_call_operand.vmem [shape: f32[1,128], index: 2, kind: input, shape index: {}]   ;;  %s1334_s3 = inlined_call_operand.vmem [shape: bf16[128,64], index: 3, kind: input, shape index: {}]   ;;  %s1335_s4 = inlined_call_operand.vmem [shape: f32[1,64], index: 4, kind: input, shape index: {}]   ;;  %s1336_s5 = inlined_call_operand.vmem [shape: f32[1,64], index: 5, kind: input, shape index: {}]   ;;  %s1337_s6 = inlined_call_operand.<no memory space> [shape: f32[1,1], index: 6, kind: input, shape index: {}]   ;;  %s1338_s7 = inlined_call_operand.vmem [shape: f32[2,1], index: 7, kind: output, shape index: {}]  }
   0x1   :  { %s21_s25 = sshll.u32 %s1222_s24, 4  ;;  %s1198_s28 = scalar_lea.hbm %s1332_s1, 8192  ;;  %s22_s25 = int_to_ptr.vmem [resolvable:$true] %s21_s25 }
   0x2   :  { %p1199_p0 = scmp.ne.s32.totalorder %s1332_s1, %s1198_s28  ;;  %p1202_p1 = scmp.lt.u32.totalorder %s1198_s28, %s1332_s1 }
   0x4   :  { %p1204_p2 = pnand %p1202_p1, %p1199_p0 }
   0x6   :  { %1207 = shalt.err (!%p1204_p2)
}
   0x7   :  { %s1208_s10 = scalar_lea.vmem %s22_s25, 8192  ;;  %p1213_p4 = scmp.lt.s32.totalorder %s22_s25, %s22_s25 }
   0x8   :  { %p1209_p3 = scmp.ne.s32.totalorder %s22_s25, %s1208_s10  ;;  %p1214_p5 = scmp.lt.s32.totalorder %s1208_s10, %s1208_s10 }
   0xa   :  { %p1215_p6 = por %p1214_p5, %p1213_p4 }
   0xc   :  { %p1216_p7 = pnand %p1215_p6, %p1209_p3 }
   0xe   :  { %1219 = shalt.err (!%p1216_p7)
}
   0xf   :  { %s1223_s11 = smov 64   ;;  %s1224_s12 = smov 4  }
  0x10   :  { %27 = dma.hbm_to_vmem [thread:$0]  %s1332_s1, 8192, %s22_s25, [#allocation4], %s1223_s11, %s1223_s11, %s1224_s12  }
  0x11   :  { %1220 = dma.done.wait [#allocation4], 8192  }
  0x12   :  { %1221 = vsyncadd [#allocation4], 4294959104  ;;  %v1120_v0 = vld [vmem:[#allocation3 + $0x40] sm:$0xff]   ;;  %v1124_v4 = vld [vmem:[#allocation3 + $0x48] sm:$0xff]   ;;  %v1225_v22 = vmov 1983009808   ;;  %v50_v24 = vlaneseq }
  0x13   :  { %v1121_v1 = vld [vmem:[#allocation3 + $0xc0] sm:$0xff]   ;;  %997 = vmatprep.subr.bf16.mxu0 %v1120_v0  ;;  %v1125_v5 = vld [vmem:[#allocation3 + $0xc8] sm:$0xff]   ;;  %v1128_v8 = vld [vmem:[#allocation3 + $0x50] sm:$0xff]   ;;  %v48_v23 = vunpack.c.l.s4 %v1225_v22  ;;  %vm1227_vm0 = vmmov 0   ;;  %vm901_vm3 = vcmask 517120   ;;  %vm914_vm4 = vcmask 1024  }
  0x14   :  { %v1122_v2 = vld [vmem:[#allocation3] sm:$0xff]   ;;  %1019 = vmatprep.subr.bf16.mxu1 %v1121_v1  ;;  %v1126_v6 = vld [vmem:[#allocation3 + $0x8] sm:$0xff]   ;;  %v1129_v9 = vld [vmem:[#allocation3 + $0xd0] sm:$0xff]   ;;  %v51_v30 = vshrl.u32 %v50_v24, 7 }
  0x15   :  { %v1123_v3 = vld [vmem:[#allocation3 + $0x80] sm:$0xff]   ;;  %998 = vmatpush3.bf16.msra.mxu0 %v1122_v2  ;;  %v1127_v7 = vld [vmem:[#allocation3 + $0x88] sm:$0xff]   ;;  %v1130_v10 = vld [vmem:[#allocation3 + $0x10] sm:$0xff]   ;;  %v49_v29 = vunpack.c.0.s8 %v48_v23 }
  0x16   :  { %1020 = vmatpush3.bf16.msra.mxu1 %v1123_v3  ;;  %999 = vmatprep.subr.bf16.mxu0 %v1124_v4  ;;  %v1131_v11 = vld [vmem:[#allocation3 + $0x90] sm:$0xff]   ;;  %v1132_v12 = vld [vmem:[#allocation3 + $0x58] sm:$0xff]   ;;  %v1136_v16 = vld [vmem:[#allocation3 + $0x60] sm:$0xff]  }
  0x17   :  { %1021 = vmatprep.subr.bf16.mxu1 %v1125_v5  ;;  %v1133_v13 = vld [vmem:[#allocation3 + $0xd8] sm:$0xff]   ;;  %v1137_v17 = vld [vmem:[#allocation3 + $0xe0] sm:$0xff]   ;;  %v1140_v20 = vld [vmem:[#allocation3 + $0x68] sm:$0xff]   ;;  %v1280_v35 = vsub.s32 %v49_v29, %v51_v30 }
  0x18   :  { %v1134_v14 = vld [vmem:[#allocation3 + $0x18] sm:$0xff]   ;;  %v1138_v18 = vld [vmem:[#allocation3 + $0x20] sm:$0xff]   ;;  %v1141_v21 = vld [vmem:[#allocation3 + $0xe8] sm:$0xff]  }
  0x19   :  { %1000 = vmatpush3.bf16.msra.mxu0 %v1126_v6  ;;  %v1135_v15 = vld [vmem:[#allocation3 + $0x98] sm:$0xff]   ;;  %v1139_v19 = vld [vmem:[#allocation3 + $0xa0] sm:$0xff]   ;;  %v1142_v25 = vld [vmem:[#allocation3 + $0x28] sm:$0xff]  }
  0x1a   :  { %1022 = vmatpush3.bf16.msra.mxu1 %v1127_v7  ;;  %1001 = vmatprep.subr.bf16.mxu0 %v1128_v8  ;;  %v1143_v26 = vld [vmem:[#allocation3 + $0xa8] sm:$0xff]   ;;  %v1144_v27 = vld [vmem:[#allocation3 + $0x70] sm:$0xff]   ;;  %v1148_v33 = vld [vmem:[#allocation3 + $0x78] sm:$0xff]  }
  0x1b   :  { %1023 = vmatprep.subr.bf16.mxu1 %v1129_v9  ;;  %v1145_v28 = vld [vmem:[#allocation3 + $0xf0] sm:$0xff]   ;;  %v1149_v34 = vld [vmem:[#allocation3 + $0xf8] sm:$0xff]   ;;  %v42_v38 = vld [vmem:[%s1331_s0] sm:$0xff] }
  0x1c   :  { %v1146_v31 = vld [vmem:[#allocation3 + $0x30] sm:$0xff]   ;;  %v1150_v36 = vld [vmem:[#allocation3 + $0x38] sm:$0xff]   ;;  %v53_v39 = vrot.slane %v42_v38, %v1280_v35  ;;  %v46_v40 = vcombine.high %v42_v38, %v42_v38  ;;  %v1153_v41 = vld [vmem:[#allocation3 + $0x140] sm:$0xff]  }
  0x1d   :  { %1002 = vmatpush3.bf16.msra.mxu0 %v1130_v10  ;;  %v1147_v32 = vld [vmem:[#allocation3 + $0xb0] sm:$0xff]   ;;  %v1151_v37 = vld [vmem:[#allocation3 + $0xb8] sm:$0xff]   ;;  %v1154_v42 = vld [vmem:[#allocation3 + $0x1c0] sm:$0xff]  }
  0x1e   :  { %1024 = vmatpush3.bf16.msra.mxu1 %v1131_v11  ;;  %1003 = vmatprep.subr.bf16.mxu0 %v1132_v12  ;;  %v61_v43 = vcombine.high %v53_v39, %v53_v39  ;;  %v60_v44 = vrot.slane %v46_v40, %v1280_v35  ;;  %v88_v45 = vpack.c.bf16 %v53_v39, %v53_v39  ;;  %v1155_v46 = vld [vmem:[#allocation3 + $0x100] sm:$0xff]   ;;  %v1157_v51 = vld [vmem:[#allocation3 + $0x148] sm:$0xff]   ;;  %v1161_v56 = vld [vmem:[#allocation3 + $0x150] sm:$0xff]  }
  0x1f   :  { %1025 = vmatprep.subr.bf16.mxu1 %v1133_v13  ;;  %v1156_v49 = vld [vmem:[#allocation3 + $0x180] sm:$0xff]   ;;  %v1158_v53 = vld [vmem:[#allocation3 + $0x1c8] sm:$0xff]   ;;  %v1162_v57 = vld [vmem:[#allocation3 + $0x1d0] sm:$0xff]  }
  0x20   :  { %v89_v47 = vpack.c.bf16 %v61_v43, %v61_v43  ;;  %v62_v48 = vcombine.high %v60_v44, %v60_v44  ;;  %v90_v50 = vpack.c.bf16 %v60_v44, %v60_v44  ;;  %v1159_v54 = vld [vmem:[#allocation3 + $0x108] sm:$0xff]   ;;  %v1163_v58 = vld [vmem:[#allocation3 + $0x110] sm:$0xff]   ;;  %v1165_v60 = vld [vmem:[#allocation3 + $0x158] sm:$0xff]  }
  0x21   :  { %1004 = vmatpush3.bf16.msra.mxu0 %v1134_v14  ;;  %v1160_v55 = vld [vmem:[#allocation3 + $0x188] sm:$0xff]   ;;  %v1164_v59 = vld [vmem:[#allocation3 + $0x190] sm:$0xff]   ;;  %v1166_v61 = vld [vmem:[#allocation3 + $0x1d8] sm:$0xff]  }
  0x22   :  { %1026 = vmatpush3.bf16.msra.mxu1 %v1135_v15  ;;  %1005 = vmatprep.subr.bf16.mxu0 %v1136_v16  ;;  %v91_v52 = vpack.c.bf16 %v62_v48, %v62_v48  ;;  %v1167_v62 = vld [vmem:[#allocation3 + $0x118] sm:$0xff]   ;;  %v1169_v0 = vld [vmem:[#allocation3 + $0x160] sm:$0xff]   ;;  %v1173_v4 = vld [vmem:[#allocation3 + $0x168] sm:$0xff]  }
  0x23   :  { %1027 = vmatprep.subr.bf16.mxu1 %v1137_v17  ;;  %647 = vmatprep.mubr.bf16.mxu0 %v89_v47  ;;  %v1168_v63 = vld [vmem:[#allocation3 + $0x198] sm:$0xff]   ;;  %v1170_v1 = vld [vmem:[#allocation3 + $0x1e0] sm:$0xff]   ;;  %v1174_v5 = vld [vmem:[#allocation3 + $0x1e8] sm:$0xff]  }
  0x24   :  { %687 = vmatprep.mubr.bf16.mxu1 %v91_v52  ;;  %v1171_v2 = vld [vmem:[#allocation3 + $0x120] sm:$0xff]   ;;  %v1175_v6 = vld [vmem:[#allocation3 + $0x128] sm:$0xff]   ;;  %v1177_v8 = vld [vmem:[#allocation3 + $0x170] sm:$0xff]  }
  0x25   :  { %1006 = vmatpush3.bf16.msra.mxu0 %v1138_v18  ;;  %v1172_v3 = vld [vmem:[#allocation3 + $0x1a0] sm:$0xff]   ;;  %v1176_v7 = vld [vmem:[#allocation3 + $0x1a8] sm:$0xff]   ;;  %v1178_v9 = vld [vmem:[#allocation3 + $0x1f0] sm:$0xff]  }
  0x26   :  { %1028 = vmatpush3.bf16.msra.mxu1 %v1139_v19  ;;  %1007 = vmatprep.subr.bf16.mxu0 %v1140_v20  ;;  %v1179_v10 = vld [vmem:[#allocation3 + $0x130] sm:$0xff]   ;;  %v1181_v12 = vld [vmem:[#allocation3 + $0x178] sm:$0xff]   ;;  %v43_v15 = vld [vmem:[%s1331_s0 + $0x8] sm:$0xff] }
  0x27   :  { %1029 = vmatprep.subr.bf16.mxu1 %v1141_v21  ;;  %v1180_v11 = vld [vmem:[#allocation3 + $0x1b0] sm:$0xff]   ;;  %v1182_v13 = vld [vmem:[#allocation3 + $0x1f8] sm:$0xff]   ;;  %v70_v17 = vrot.slane %v43_v15, %v1280_v35  ;;  %v63_v18 = vcombine.high %v43_v15, %v43_v15 }
  0x28   :  { %v1183_v14 = vld [vmem:[#allocation3 + $0x138] sm:$0xff]   ;;  %v1188_v29 = vld [vmem:[%s1334_s3 + $0x10] sm:$0xff]  }
  0x29   :  { %1008 = vmatpush3.bf16.msra.mxu0 %v1142_v25  ;;  %v1184_v16 = vld [vmem:[#allocation3 + $0x1b8] sm:$0xff]   ;;  %v78_v19 = vcombine.high %v70_v17, %v70_v17  ;;  %v77_v20 = vrot.slane %v63_v18, %v1280_v35  ;;  %v92_v21 = vpack.c.bf16 %v70_v17, %v70_v17 }
  0x2a   :  { %1030 = vmatpush3.bf16.msra.mxu1 %v1143_v26  ;;  %1009 = vmatprep.subr.bf16.mxu0 %v1144_v27  ;;  %v1186_v26 = vld [vmem:[%s1334_s3] sm:$0xff]   ;;  %v1226_v27 = vmov 0.0   ;;  %v1189_v30 = vld [vmem:[%s1334_s3 + $0x18] sm:$0xff]  }
  0x2b   :  { %1031 = vmatprep.subr.bf16.mxu1 %v1145_v28  ;;  %v93_v22 = vpack.c.bf16 %v78_v19, %v78_v19  ;;  %v79_v23 = vcombine.high %v77_v20, %v77_v20  ;;  %v94_v24 = vpack.c.bf16 %v77_v20, %v77_v20  ;;  %v1187_v28 = vld [vmem:[%s1334_s3 + $0x8] sm:$0xff]  }
  0x2d   :  { %1010 = vmatpush3.bf16.msra.mxu0 %v1146_v31  ;;  %v95_v25 = vpack.c.bf16 %v79_v23, %v79_v23  ;;  %v1190_v31 = vld [vmem:[%s1334_s3 + $0x20] sm:$0xff]  }
  0x2e   :  { %1032 = vmatpush3.bf16.msra.mxu1 %v1147_v32  ;;  %1011 = vmatprep.subr.bf16.mxu0 %v1148_v33  ;;  %v1191_v32 = vld [vmem:[%s1334_s3 + $0x28] sm:$0xff]   ;;  %v1192_v33 = vld [vmem:[%s1334_s3 + $0x30] sm:$0xff]  }
  0x2f   :  { %1033 = vmatprep.subr.bf16.mxu1 %v1149_v34  ;;  %v1193_v34 = vld [vmem:[%s1334_s3 + $0x38] sm:$0xff]  }
  0x31   :  { %1012 = vmatpush3.bf16.msra.mxu0 %v1150_v36  ;;  %v921_v36 = vld [vmem:[%s1333_s2] ss:$0 sm:$0xff] }
  0x32   :  { %1034 = vmatpush3.bf16.msra.mxu1 %v1151_v37  ;;  %1041 = vmatprep.subr.bf16.mxu0 %v1153_v41 }
  0x33   :  { %1063 = vmatprep.subr.bf16.mxu1 %v1154_v42 }
  0x34   :  { %648 = vmatmul.mubr.bf16.vlgmr.msra.gmra.mrb[0].mxu0 %v88_v45 }
  0x35   :  { %1042 = vmatpush3.bf16.msra.mxu0 %v1155_v46  ;;  %688 = vmatmul.mubr.bf16.vlgmr.msra.gmra.mrb[0].mxu1 %v90_v50 }
  0x36   :  { %1043 = vmatprep.subr.bf16.mxu0 %v1157_v51  ;;  %1064 = vmatpush3.bf16.msra.mxu1 %v1156_v49 }
  0x37   :  { %1065 = vmatprep.subr.bf16.mxu1 %v1158_v53  ;;  %727 = vmatprep.mubr.bf16.mxu0 %v93_v22 }
  0x38   :  { %767 = vmatprep.mubr.bf16.mxu1 %v95_v25 }
  0x39   :  { %1044 = vmatpush3.bf16.msra.mxu0 %v1159_v54 }
  0x3a   :  { %1045 = vmatprep.subr.bf16.mxu0 %v1161_v56  ;;  %1066 = vmatpush3.bf16.msra.mxu1 %v1160_v55 }
  0x3b   :  { %1067 = vmatprep.subr.bf16.mxu1 %v1162_v57 }
  0x3d   :  { %1046 = vmatpush3.bf16.msra.mxu0 %v1163_v58 }
  0x3e   :  { %1047 = vmatprep.subr.bf16.mxu0 %v1165_v60  ;;  %1068 = vmatpush3.bf16.msra.mxu1 %v1164_v59 }
  0x3f   :  { %1069 = vmatprep.subr.bf16.mxu1 %v1166_v61 }
  0x41   :  { %1048 = vmatpush3.bf16.msra.mxu0 %v1167_v62 }
  0x42   :  { %1049 = vmatprep.subr.bf16.mxu0 %v1169_v0  ;;  %1070 = vmatpush3.bf16.msra.mxu1 %v1168_v63  ;;  %v986_v63 = vld [vmem:[%s1335_s4] ss:$0 sm:$0xff] }
  0x43   :  { %1071 = vmatprep.subr.bf16.mxu1 %v1170_v1 }
  0x45   :  { %1050 = vmatpush3.bf16.msra.mxu0 %v1171_v2 }
  0x46   :  { %1051 = vmatprep.subr.bf16.mxu0 %v1173_v4  ;;  %1072 = vmatpush3.bf16.msra.mxu1 %v1172_v3 }
  0x47   :  { %1073 = vmatprep.subr.bf16.mxu1 %v1174_v5 }
  0x49   :  { %1052 = vmatpush3.bf16.msra.mxu0 %v1175_v6  ;;  %v995_v6 = vld [vmem:[%s1336_s5] ss:$0 sm:$0xff] }
  0x4a   :  { %1053 = vmatprep.subr.bf16.mxu0 %v1177_v8  ;;  %1074 = vmatpush3.bf16.msra.mxu1 %v1176_v7 }
  0x4b   :  { %1075 = vmatprep.subr.bf16.mxu1 %v1178_v9 }
  0x4d   :  { %1054 = vmatpush3.bf16.msra.mxu0 %v1179_v10  ;;  %v906_v10 = vstv %s1337_s6 }
  0x4e   :  { %1055 = vmatprep.subr.bf16.mxu0 %v1181_v12  ;;  %1076 = vmatpush3.bf16.msra.mxu1 %v1180_v11 }
  0x4f   :  { %1077 = vmatprep.subr.bf16.mxu1 %v1182_v13 }
  0x51   :  { %1056 = vmatpush3.bf16.msra.mxu0 %v1183_v14 }
  0x52   :  { %1078 = vmatpush3.bf16.msra.mxu1 %v1184_v16  ;;  %1094 = vmatprep.subr.bf16.mxu0 %v1226_v27 }
  0x54   :  { %728 = vmatmul.mubr.bf16.vlgmr.msra.gmra.mrb[4].mxu0 %v92_v21 }
  0x55   :  { %768 = vmatmul.mubr.bf16.vlgmr.msra.gmra.mrb[4].mxu1 %v94_v24  ;;  %1095 = vmatpush3.bf16.msra.mxu0 %v1186_v26 }
  0x56   :  { %1096 = vmatprep.subr.bf16.mxu0 %v1226_v27  ;;  %1110 = vmatprep.mubr.msk.bf16.mxu0 %vm1227_vm0, %v1226_v27 }
  0x59   :  { %1097 = vmatpush3.bf16.msra.mxu0 %v1187_v28 }
  0x5a   :  { %1098 = vmatprep.subr.bf16.mxu0 %v1226_v27 }
  0x5d   :  { %1099 = vmatpush3.bf16.msra.mxu0 %v1188_v29 }
  0x5e   :  { %1100 = vmatprep.subr.bf16.mxu0 %v1226_v27 }
  0x61   :  { %1101 = vmatpush3.bf16.msra.mxu0 %v1189_v30 }
  0x62   :  { %1102 = vmatprep.subr.bf16.mxu0 %v1226_v27 }
  0x65   :  { %1103 = vmatpush3.bf16.msra.mxu0 %v1190_v31 }
  0x66   :  { %1104 = vmatprep.subr.bf16.mxu0 %v1226_v27 }
  0x69   :  { %1105 = vmatpush3.bf16.msra.mxu0 %v1191_v32 }
  0x6a   :  { %1106 = vmatprep.subr.bf16.mxu0 %v1226_v27 }
  0x6d   :  { %1107 = vmatpush3.bf16.msra.mxu0 %v1192_v33 }
  0x6e   :  { %1108 = vmatprep.subr.bf16.mxu0 %v1226_v27 }
  0x71   :  { %1109 = vmatpush3.bf16.msra.mxu0 %v1193_v34 }
 0x107   :  { %v1013_v35 = vpop.f32.mrb[0].mxu0 }
 0x108   :  { %v1014_v37 = vpop.f32.mrb[1].mxu0  ;;  %v1035_v38 = vpop.f32.mrb[0].mxu1 }
 0x109   :  { %v1015_v39 = vadd.f32 %v1014_v37, %v1013_v35  ;;  %v1016_v40 = vpop.f32.mrb[2].mxu0  ;;  %v1036_v41 = vpop.f32.mrb[1].mxu1 }
 0x10a   :  { %v1017_v42 = vpop.f32.mrb[3].mxu0  ;;  %v1037_v44 = vadd.f32 %v1036_v41, %v1035_v38  ;;  %v1038_v45 = vpop.f32.mrb[2].mxu1 }
 0x10b   :  { %v650_v43 = vadd.f32 %v1015_v39, %v921_v36  ;;  %v1039_v46 = vpop.f32.mrb[3].mxu1 }
 0x10d   :  { %v690_v47 = vadd.f32 %v1037_v44, %v650_v43 }
 0x127   :  { %v1057_v48 = vpop.f32.mrb[4].mxu0 }
 0x128   :  { %v1058_v49 = vpop.f32.mrb[5].mxu0  ;;  %v1079_v50 = vpop.f32.mrb[4].mxu1 }
 0x129   :  { %v1059_v51 = vadd.f32 %v1058_v49, %v1057_v48  ;;  %v1060_v52 = vpop.f32.mrb[6].mxu0  ;;  %v1080_v53 = vpop.f32.mrb[5].mxu1 }
 0x12a   :  { %v1061_v54 = vpop.f32.mrb[7].mxu0  ;;  %v1081_v56 = vadd.f32 %v1080_v53, %v1079_v50  ;;  %v1082_v57 = vpop.f32.mrb[6].mxu1 }
 0x12b   :  { %v730_v55 = vadd.f32 %v1059_v51, %v690_v47  ;;  %v1083_v58 = vpop.f32.mrb[7].mxu1 }
 0x12d   :  { %v770_v59 = vadd.f32 %v1081_v56, %v730_v55 }
 0x12f   :  { %vm775_vm1 = vcmp.gt.f32.partialorder %v770_v59, 0.0  ;;  %v776_v60 = vmul.f32 0.2, %v770_v59 }
 0x131   :  { %v777_v61 = vsel %vm775_vm1, %v770_v59, %v776_v60 }
 0x132   :  { %v778_v62 = vpack.c.bf16 %v777_v61, %v777_v61 }
 0x134   :  { %1111 = vmatmul.mubr.bf16.vlgmr.msra.gmra.mrb[8].mxu0 %v778_v62 }
 0x207   :  { %v884_v0 = vpop.f32.mrb[8].mxu0 }
 0x208   :  { %v885_v1 = vadd.f32 %v986_v63, %v884_v0  ;;  %v1112_v2 = vpop.f32.mrb[9].mxu0 }
 0x209   :  { %v887_v3 = vpop.f32.mrb[10].mxu0 }
 0x20a   :  { %v891_v4 = vmul.f32 0.2, %v885_v1  ;;  %v1113_v5 = vpop.f32.mrb[11].mxu0  ;;  %vm890_vm2 = vcmp.gt.f32.partialorder %v885_v1, 0.0 }
 0x20c   :  { %v892_v7 = vsel %vm890_vm2, %v885_v1, %v891_v4 }
 0x20d   :  { %v900_v8 = vmul.f32 %v995_v6, %v892_v7 }
 0x20f   :  { %v902_v9 = vsel %vm901_vm3, %v900_v8, 0.0 }
 0x210   :  { %903 = vadd.xlane.f32.xlu0 %v902_v9 }
 0x29d   :  { %v904_v11 = vpop.xlane.xlu0 %903 }
 0x29e   :  { %v907_v12 = vadd.f32 %v906_v10, %v904_v11 }
 0x2a0   :  { %v996_v13 = vmul.f32 -1.442695, %v907_v12 }
 0x2a2   :  { %1194 = vpow2.f32 %v996_v13 }
 0x2ac   :  { %v1195_v14 = vpop.eup %1194 }
 0x2ad   :  { %v911_v15 = vadd.f32 1.0, %v1195_v14 }
 0x2af   :  { %1196 = vrcp.f32 %v911_v15 }
 0x2b9   :  { %v1197_v16 = vpop.eup %1196 }
 0x2ba   :  { %915 = vst.msk [vmem:[%s1338_s7] sm:$0x3] %vm914_vm4, %v1197_v16 }
 0x2bb   :  { %920 = vsyncpa [#allocation4], 1 }

</bundles_post_ra>
